<compile_context>
chip_gen: v5e
topology: v5e:2x2
jax: 0.10.0
libtpu: 0.0.40
codegen_flags: <defaults>
</compile_context>

<pallas_src>
import functools
import math

import jax
import jax.numpy as jnp
from jax.experimental import pallas as pl
from jax.experimental.pallas import tpu as pltpu


def _round_up(v: int, m: int) -> int:
    return (v + m - 1) // m * m


def _ffn_kernel(seed_ref, x_ref, w1_ref, b1_ref, w2_ref, b2_ref, o_ref, acc_ref,
                *, tile_m: int, tile_ff: int, p_drop: float, training: bool):
    j = pl.program_id(1)

    @pl.when(j == 0)
    def _():
        acc_ref[...] = jnp.zeros_like(acc_ref)

    # linear_1 (this d_ff chunk) + bias + relu  -> h: (tile_m, tile_ff) f32
    h = jnp.dot(x_ref[...], w1_ref[...], preferred_element_type=jnp.float32)
    h = jnp.maximum(h + b1_ref[...], 0.0)

    if training and p_drop > 0.0:
        # Inverted dropout: keep with prob (1-p), scale kept values by 1/(1-p).
        # Counter-based hash of (seed, global row, global d_ff column), so the
        # dropout mask does not depend on tile_m / tile_ff.
        rows = (jax.lax.broadcasted_iota(jnp.int32, h.shape, 0)
                + pl.program_id(0) * tile_m).astype(jnp.uint32)
        cols = (jax.lax.broadcasted_iota(jnp.int32, h.shape, 1)
                + j * tile_ff).astype(jnp.uint32)
        k = rows * jnp.uint32(0x9E3779B1)
        k = k + cols * jnp.uint32(0x85EBCA77)
        k = k + seed_ref[0].astype(jnp.uint32)
        # murmur3 finalizer (good enough mixing for dropout)
        k = k ^ (k >> 16)
        k = k * jnp.uint32(0x85EBCA6B)
        k = k ^ (k >> 13)
        k = k * jnp.uint32(0xC2B2AE35)
        k = k ^ (k >> 16)
        threshold = jnp.uint32(min(int(round(p_drop * (2.0 ** 32))), 2 ** 32 - 1))
        keep = k >= threshold
        h = jnp.where(keep, h * (1.0 / (1.0 - p_drop)), 0.0)

    # linear_2 partial sum for this d_ff chunk (MXU, f32 accumulation).
    acc_ref[...] += jnp.dot(h.astype(w2_ref.dtype), w2_ref[...],
                            preferred_element_type=jnp.float32)

    @pl.when(j == pl.num_programs(1) - 1)
    def _():
        o_ref[...] = (acc_ref[...] + b2_ref[...]).astype(o_ref.dtype)


def feed_forward_block(x, w1, b1, w2, b2, *, p_drop=0.1, training=False,
                       seed=0, tile_m=256, tile_ff=512, use_bf16=False):
    """x: (batch, seq, d_model) float32. Returns (batch, seq, d_model)."""
    B, S, d_model = x.shape
    d_ff = w1.shape[1]
    M = B * S

    # Lane-dense (multiple of 128) padding of feature dims, tile-aligned rows.
    d_model_p = _round_up(d_model, 128)
    d_ff_p = _round_up(d_ff, 128)
    tile_m = min(tile_m, _round_up(M, 8))          # don't over-pad tiny inputs
    if d_ff_p <= tile_ff:
        tile_ff = d_ff_p
    else:
        d_ff_p = _round_up(d_ff_p, tile_ff)
    M_p = _round_up(M, tile_m)

    x2 = jnp.pad(x.reshape(M, d_model), ((0, M_p - M), (0, d_model_p - d_model)))
    w1_p = jnp.pad(w1, ((0, d_model_p - d_model), (0, d_ff_p - d_ff)))
    b1_p = jnp.pad(b1, (0, d_ff_p - d_ff)).reshape(1, d_ff_p)
    w2_p = jnp.pad(w2, ((0, d_ff_p - d_ff), (0, d_model_p - d_model)))
    b2_p = jnp.pad(b2, (0, d_model_p - d_model)).reshape(1, d_model_p)
    if use_bf16:  # halve weight/activation HBM+VMEM bytes, bf16 MXU path
        x2 = x2.astype(jnp.bfloat16)
        w1_p = w1_p.astype(jnp.bfloat16)
        w2_p = w2_p.astype(jnp.bfloat16)
    seed_arr = jnp.asarray([seed], dtype=jnp.int32)

    grid = (M_p // tile_m, d_ff_p // tile_ff)

    kernel = functools.partial(_ffn_kernel, tile_m=tile_m, tile_ff=tile_ff,
                               p_drop=float(p_drop), training=bool(training))

    # Explicit VMEM budget: double-buffered blocks + accumulator + h, with 2x
    # headroom, clamped to a v7x-safe ceiling (64 MiB physical per TC there).
    itemsize = 2 if use_bf16 else 4
    need = (2 * itemsize * (tile_m * d_model_p        # x tile
                            + d_model_p * tile_ff     # W1 chunk
                            + tile_ff * d_model_p)    # W2 chunk
            + 2 * 4 * (tile_ff + d_model_p            # b1, b2
                       + tile_m * d_model_p)          # out tile
            + 4 * tile_m * d_model_p                  # f32 accumulator
            + 4 * tile_m * tile_ff)                   # h intermediate
    vmem_limit = int(min(max(2 * need, 32 * 1024 * 1024), 56 * 1024 * 1024))

    out = pl.pallas_call(
        kernel,
        out_shape=jax.ShapeDtypeStruct((M_p, d_model_p), x.dtype),
        grid_spec=pltpu.PrefetchScalarGridSpec(
            num_scalar_prefetch=1,                      # seed -> SMEM
            grid=grid,
            in_specs=[
                pl.BlockSpec((tile_m, d_model_p), lambda i, j, s: (i, 0)),   # x rows
                pl.BlockSpec((d_model_p, tile_ff), lambda i, j, s: (0, j)),  # W1 chunk
                pl.BlockSpec((1, tile_ff), lambda i, j, s: (0, j)),          # b1 chunk
                pl.BlockSpec((tile_ff, d_model_p), lambda i, j, s: (j, 0)),  # W2 chunk
                pl.BlockSpec((1, d_model_p), lambda i, j, s: (0, 0)),        # b2
            ],
            out_specs=pl.BlockSpec((tile_m, d_model_p), lambda i, j, s: (i, 0)),
            scratch_shapes=[pltpu.VMEM((tile_m, d_model_p), jnp.float32)],
        ),
        compiler_params=pltpu.CompilerParams(
            dimension_semantics=("parallel", "arbitrary"),
            vmem_limit_bytes=vmem_limit),
    )(seed_arr, x2, w1_p, b1_p, w2_p, b2_p)

    return out[:M, :d_model].reshape(B, S, d_model)


def _init_linear(key, in_features, out_features):
    # Mimics torch.nn.Linear default init: U(-1/sqrt(in), 1/sqrt(in)).
    kw, kb = jax.random.split(key)
    bound = 1.0 / math.sqrt(in_features)
    # stored as (in, out) == transpose of torch's (out, in)
    w = jax.random.uniform(kw, (in_features, out_features), jnp.float32,
                           minval=-bound, maxval=bound)
    b = jax.random.uniform(kb, (out_features,), jnp.float32,
                           minval=-bound, maxval=bound)
    return w, b


if __name__ == "__main__":
    batch, seq, d_model, d_ff = 2, 8, 32, 64
    dropout_p = 0.1

    key = jax.random.PRNGKey(0)
    kx, k1, k2 = jax.random.split(key, 3)

    x = jax.random.normal(kx, (batch, seq, d_model), jnp.float32)
    w1, b1 = _init_linear(k1, d_model, d_ff)
    w2, b2 = _init_linear(k2, d_ff, d_model)

    # Eval-mode forward (dropout is identity), matching module.eval() semantics.
    y = feed_forward_block(x, w1, b1, w2, b2, p_drop=dropout_p, training=False)
    y = jax.block_until_ready(y)

    # Pure-JAX reference for the eval-mode path.
    ref = jnp.maximum(x.reshape(-1, d_model) @ w1 + b1, 0.0) @ w2 + b2
    ref = ref.reshape(batch, seq, d_model)
    assert y.shape == (batch, seq, d_model)
    assert jnp.allclose(y, ref, atol=1e-5, rtol=1e-4), "mismatch vs reference"

    # Train-mode path (in-kernel hash-PRNG dropout): exercise it once.
    y_train = feed_forward_block(x, w1, b1, w2, b2, p_drop=dropout_p,
                                 training=True, seed=123)
    y_train = jax.block_until_ready(y_train)
    assert y_train.shape == (batch, seq, d_model)
    assert bool(jnp.all(jnp.isfinite(y_train)))

    # bf16-MXU eval path (perf option for v6e/v7x): just exercise it.
    y_bf16 = feed_forward_block(x, w1, b1, w2, b2, p_drop=dropout_p,
                                training=False, use_bf16=True)
    y_bf16 = jax.block_until_ready(y_bf16)
    assert bool(jnp.all(jnp.isfinite(y_bf16)))

    print("KERNEL_OK")
</pallas_src>

<mosaic_0001>
module attributes {stable_mosaic.version = 11 : i64} {
  func.func @_ffn_kernel(%arg0: i32, %arg1: i32, %arg2: memref<1xi32, #tpu.memory_space<smem>>, %arg3: memref<16x128xf32, #tpu.memory_space<vmem>>, %arg4: memref<128x128xf32, #tpu.memory_space<vmem>>, %arg5: memref<1x128xf32, #tpu.memory_space<vmem>>, %arg6: memref<128x128xf32, #tpu.memory_space<vmem>>, %arg7: memref<1x128xf32, #tpu.memory_space<vmem>>, %arg8: memref<16x128xf32, #tpu.memory_space<vmem>>, %arg9: memref<16x128xf32, #tpu.memory_space<vmem>>) attributes {dimension_semantics = [#tpu.dimension_semantics<parallel>, #tpu.dimension_semantics<arbitrary>], iteration_bounds = array<i64: 1, 1>, scalar_prefetch = 1 : i64, scratch_operands = 1 : i64, tpu.core_type = #tpu.core_type<tc>, window_params = [{transform_indices = @transform_0, window_bounds = array<i64: 16, 128>}, {transform_indices = @transform_1, window_bounds = array<i64: 128, 128>}, {transform_indices = @transform_2, window_bounds = array<i64: 1, 128>}, {transform_indices = @transform_3, window_bounds = array<i64: 128, 128>}, {pipeline_mode = #tpu.pipeline_mode<synchronous>, transform_indices = @transform_4, window_bounds = array<i64: 1, 128>}, {transform_indices = @transform_5, window_bounds = array<i64: 16, 128>}]} {
    %c0_i32 = arith.constant 0 : i32
    %0 = arith.cmpi eq, %arg1, %c0_i32 : i32
    %1 = arith.extui %0 : i1 to i32
    %c0_i32_0 = arith.constant 0 : i32
    %2 = arith.cmpi ne, %1, %c0_i32_0 : i32
    scf.if %2 {
      %cst_16 = arith.constant 0.000000e+00 : f32
      %19 = vector.broadcast %cst_16 : f32 to vector<16x128xf32>
      %c0_17 = arith.constant 0 : index
      %c0_18 = arith.constant 0 : index
      %20 = vector.load %arg9[%c0_17, %c0_18] : memref<16x128xf32, #tpu.memory_space<vmem>>, vector<16x128xf32>
      tpu.vector_store %arg9[%c0_17, %c0_18], %19 {strides = array<i32>} : memref<16x128xf32, #tpu.memory_space<vmem>>, vector<16x128xf32>,
    } else {
    }
    %c0 = arith.constant 0 : index
    %c0_1 = arith.constant 0 : index
    %3 = vector.load %arg3[%c0, %c0_1] : memref<16x128xf32, #tpu.memory_space<vmem>>, vector<16x128xf32>
    %c0_2 = arith.constant 0 : index
    %c0_3 = arith.constant 0 : index
    %4 = vector.load %arg4[%c0_2, %c0_3] : memref<128x128xf32, #tpu.memory_space<vmem>>, vector<128x128xf32>
    %cst = arith.constant dense<0.000000e+00> : vector<16x128xf32>
    %5 = tpu.matmul %3, %4, %cst {dimension_numbers = #tpu.dot_dimension_numbers<[1], [0], [0], [1], [0, 0, 1, 1], [], []>} : vector<16x128xf32>, vector<128x128xf32>, vector<16x128xf32> -> vector<16x128xf32>
    %c0_4 = arith.constant 0 : index
    %c0_5 = arith.constant 0 : index
    %6 = vector.load %arg5[%c0_4, %c0_5] : memref<1x128xf32, #tpu.memory_space<vmem>>, vector<1x128xf32>
    %7 = vector.broadcast %6 : vector<1x128xf32> to vector<16x128xf32>
    %8 = arith.addf %5, %7 : vector<16x128xf32>
    %cst_6 = arith.constant 0.000000e+00 : f32
    %9 = vector.broadcast %cst_6 : f32 to vector<16x128xf32>
    %10 = arith.maximumf %8, %9 : vector<16x128xf32>
    %c0_7 = arith.constant 0 : index
    %c0_8 = arith.constant 0 : index
    %11 = vector.load %arg9[%c0_7, %c0_8] : memref<16x128xf32, #tpu.memory_space<vmem>>, vector<16x128xf32>
    %c0_9 = arith.constant 0 : index
    %c0_10 = arith.constant 0 : index
    %12 = vector.load %arg6[%c0_9, %c0_10] : memref<128x128xf32, #tpu.memory_space<vmem>>, vector<128x128xf32>
    %cst_11 = arith.constant dense<0.000000e+00> : vector<16x128xf32>
    %13 = tpu.matmul %10, %12, %cst_11 {dimension_numbers = #tpu.dot_dimension_numbers<[1], [0], [0], [1], [0, 0, 1, 1], [], []>} : vector<16x128xf32>, vector<128x128xf32>, vector<16x128xf32> -> vector<16x128xf32>
    %14 = arith.addf %11, %13 : vector<16x128xf32>
    %c0_12 = arith.constant 0 : index
    %c0_13 = arith.constant 0 : index
    %15 = vector.load %arg9[%c0_12, %c0_13] : memref<16x128xf32, #tpu.memory_space<vmem>>, vector<16x128xf32>
    tpu.vector_store %arg9[%c0_12, %c0_13], %14 {strides = array<i32>} : memref<16x128xf32, #tpu.memory_space<vmem>>, vector<16x128xf32>,
    %c0_i32_14 = arith.constant 0 : i32
    %16 = arith.cmpi eq, %arg1, %c0_i32_14 : i32
    %17 = arith.extui %16 : i1 to i32
    %c0_i32_15 = arith.constant 0 : i32
    %18 = arith.cmpi ne, %17, %c0_i32_15 : i32
    scf.if %18 {
      %c0_16 = arith.constant 0 : index
      %c0_17 = arith.constant 0 : index
      %19 = vector.load %arg9[%c0_16, %c0_17] : memref<16x128xf32, #tpu.memory_space<vmem>>, vector<16x128xf32>
      %c0_18 = arith.constant 0 : index
      %c0_19 = arith.constant 0 : index
      %20 = vector.load %arg7[%c0_18, %c0_19] : memref<1x128xf32, #tpu.memory_space<vmem>>, vector<1x128xf32>
      %21 = vector.broadcast %20 : vector<1x128xf32> to vector<16x128xf32>
      %22 = arith.addf %19, %21 : vector<16x128xf32>
      %c0_20 = arith.constant 0 : index
      %c0_21 = arith.constant 0 : index
      %23 = vector.load %arg8[%c0_20, %c0_21] : memref<16x128xf32, #tpu.memory_space<vmem>>, vector<16x128xf32>
      tpu.vector_store %arg8[%c0_20, %c0_21], %22 {strides = array<i32>} : memref<16x128xf32, #tpu.memory_space<vmem>>, vector<16x128xf32>,
    } else {
    }
    return
  }
  func.func @transform_0(%arg0: i32, %arg1: i32, %arg2: memref<1xi32, #tpu.memory_space<smem>>) -> (i32, i32) {
    %c0_i32 = arith.constant 0 : i32
    %c0_i32_0 = arith.constant 0 : i32
    return %arg0, %c0_i32 : i32, i32
  }
  func.func @transform_1(%arg0: i32, %arg1: i32, %arg2: memref<1xi32, #tpu.memory_space<smem>>) -> (i32, i32) {
    %c0_i32 = arith.constant 0 : i32
    %c0_i32_0 = arith.constant 0 : i32
    return %c0_i32, %arg1 : i32, i32
  }
  func.func @transform_2(%arg0: i32, %arg1: i32, %arg2: memref<1xi32, #tpu.memory_space<smem>>) -> (i32, i32) {
    %c0_i32 = arith.constant 0 : i32
    %c0_i32_0 = arith.constant 0 : i32
    return %c0_i32, %arg1 : i32, i32
  }
  func.func @transform_3(%arg0: i32, %arg1: i32, %arg2: memref<1xi32, #tpu.memory_space<smem>>) -> (i32, i32) {
    %c0_i32 = arith.constant 0 : i32
    %c0_i32_0 = arith.constant 0 : i32
    return %arg1, %c0_i32 : i32, i32
  }
  func.func @transform_4(%arg0: i32, %arg1: i32, %arg2: memref<1xi32, #tpu.memory_space<smem>>) -> (i32, i32) {
    %c0_i32 = arith.constant 0 : i32
    %c0_i32_0 = arith.constant 0 : i32
    %c0_i32_1 = arith.constant 0 : i32
    return %c0_i32, %c0_i32_0 : i32, i32
  }
  func.func @transform_5(%arg0: i32, %arg1: i32, %arg2: memref<1xi32, #tpu.memory_space<smem>>) -> (i32, i32) {
    %c0_i32 = arith.constant 0 : i32
    %c0_i32_0 = arith.constant 0 : i32
    return %arg0, %c0_i32 : i32, i32
  }
}

</mosaic_0001>

<bundles_post_ra>
// kernel: tpu_custom_call.1
= control target key start
LH: loop header
LB: loop body
LE: loop exit
PB: predicated region body
PF: predicated region fallthrough
CT: control target
= control target key end

     0   :  { %12 = vsyncpa [#allocation6], 0  ;;  %s414_s0 = inlined_call_operand.<no memory space> [shape: s32[1], index: 0, kind: input, shape index: {}]   ;;  %s415_s1 = inlined_call_operand.hbm [shape: f32[16,128], index: 1, kind: input, shape index: {}]   ;;  %s416_s2 = inlined_call_operand.hbm [shape: f32[128,128], index: 2, kind: input, shape index: {}]   ;;  %s417_s3 = inlined_call_operand.vmem [shape: f32[1,128], index: 3, kind: input, shape index: {}]   ;;  %s418_s4 = inlined_call_operand.hbm [shape: f32[128,128], index: 4, kind: input, shape index: {}]   ;;  %s419_s5 = inlined_call_operand.vmem [shape: f32[1,128], index: 5, kind: input, shape index: {}]   ;;  %s420_s6 = inlined_call_operand.hbm [shape: f32[16,128], index: 6, kind: output, shape index: {}]  }
   0x1   :  { %13 = vsyncpa [#allocation9], 0 }
   0x2   :  { %14 = vsyncpa [#allocation7], 0  ;;  %s32_s22 = sshll.u32 %s416_s2, 4  ;;  %s343_s23 = smov [#allocation8]   ;;  %s33_s22 = int_to_ptr.hbm [resolvable:$true] %s32_s22 }
   0x3   :  { %s34_s24 = sshll.u32 %s343_s23, 4  ;;  %s19_s27 = sshll.u32 %s415_s1, 4  ;;  %s35_s24 = int_to_ptr.vmem [resolvable:$true] %s34_s24  ;;  %s20_s27 = int_to_ptr.hbm [resolvable:$true] %s19_s27 }
   0x4   :  { %s344_s28 = smov 128   ;;  %s345_s29 = smov 8  }
   0x5   :  { %40 = dma.hbm_to_vmem [thread:$0]  %s33_s22, 2048, %s35_s24, [#allocation9], %s344_s28, %s344_s28, %s345_s29  }
   0x6   :  { %s346_s30 = smov [#allocation5]   ;;  %s47_s2 = sshll.u32 %s418_s4, 4  ;;  %s48_s2 = int_to_ptr.hbm [resolvable:$true] %s47_s2 }
   0x7   :  { %s21_s7 = sshll.u32 %s346_s30, 4  ;;  %s347_s1 = smov [#allocation10]   ;;  %s22_s7 = int_to_ptr.vmem [resolvable:$true] %s21_s7 }
   0x8   :  { %27 = dma.hbm_to_vmem [thread:$0]  %s20_s27, 256, %s22_s7, [#allocation6], %s344_s28, %s344_s28, %s345_s29  }
   0x9   :  { %s49_s10 = sshll.u32 %s347_s1, 4  ;;  %s50_s10 = int_to_ptr.vmem [resolvable:$true] %s49_s10 }
   0xa   :  { %55 = dma.hbm_to_vmem [thread:$0]  %s48_s2, 2048, %s50_s10, [#allocation9], %s344_s28, %s344_s28, %s345_s29  }
   0xb   :  { %337 = dma.done.wait [#allocation6], 256  }
   0xc   :  { %338 = vsyncadd [#allocation6], 4294967040 }
   0xd   :  { %339 = dma.done.wait [#allocation9], 4096  }
   0xe   :  { %340 = vsyncadd [#allocation9], 4294963200  ;;  %v93_v0 = vld [vmem:[#allocation8 + $0x78] sm:$0xff]  ;;  %v92_v1 = vld [vmem:[#allocation8 + $0x70] sm:$0xff]  ;;  %s348_s14 = smov [#allocation11]  }
   0xf   :  { %201 = vmatpush.msra.mxu2 %v93_v0  ;;  %98 = vmatpush.msra.mxu0 %v93_v0  ;;  %v91_v2 = vld [vmem:[#allocation8 + $0x68] sm:$0xff]  ;;  %v90_v3 = vld [vmem:[#allocation8 + $0x60] sm:$0xff]  ;;  %v89_v4 = vld [vmem:[#allocation8 + $0x58] sm:$0xff]  ;;  %s185_s15 = sshll.u32 %s348_s14, 4  ;;  %s186_s15 = int_to_ptr.vmem [resolvable:$true] %s185_s15 }
  0x10   :  { %v140_v5 = vld [vmem:[#allocation10 + $0x78] sm:$0xff]  ;;  %v139_v6 = vld [vmem:[#allocation10 + $0x70] sm:$0xff]  ;;  %v138_v8 = vld [vmem:[#allocation10 + $0x68] sm:$0xff] }
  0x11   :  { %202 = vmatpush.msra.mxu2 %v92_v1  ;;  %99 = vmatpush.msra.mxu0 %v92_v1  ;;  %v88_v7 = vld [vmem:[#allocation8 + $0x50] sm:$0xff]  ;;  %v87_v9 = vld [vmem:[#allocation8 + $0x48] sm:$0xff]  ;;  %v137_v10 = vld [vmem:[#allocation10 + $0x60] sm:$0xff] }
  0x12   :  { %217 = vmatpush.msra.mxu3 %v140_v5  ;;  %141 = vmatpush.msra.mxu1 %v140_v5  ;;  %v86_v11 = vld [vmem:[#allocation8 + $0x40] sm:$0xff]  ;;  %v136_v12 = vld [vmem:[#allocation10 + $0x58] sm:$0xff]  ;;  %v135_v14 = vld [vmem:[#allocation10 + $0x50] sm:$0xff] }
  0x13   :  { %203 = vmatpush.msra.mxu2 %v91_v2  ;;  %100 = vmatpush.msra.mxu0 %v91_v2  ;;  %v85_v13 = vld [vmem:[#allocation8 + $0x38] sm:$0xff]  ;;  %v84_v15 = vld [vmem:[#allocation8 + $0x30] sm:$0xff]  ;;  %v134_v16 = vld [vmem:[#allocation10 + $0x48] sm:$0xff] }
  0x14   :  { %218 = vmatpush.msra.mxu3 %v139_v6  ;;  %142 = vmatpush.msra.mxu1 %v139_v6  ;;  %v83_v17 = vld [vmem:[#allocation8 + $0x28] sm:$0xff]  ;;  %v133_v18 = vld [vmem:[#allocation10 + $0x40] sm:$0xff]  ;;  %v132_v20 = vld [vmem:[#allocation10 + $0x38] sm:$0xff] }
  0x15   :  { %204 = vmatpush.msra.mxu2 %v90_v3  ;;  %101 = vmatpush.msra.mxu0 %v90_v3  ;;  %v82_v19 = vld [vmem:[#allocation8 + $0x20] sm:$0xff]  ;;  %v81_v21 = vld [vmem:[#allocation8 + $0x18] sm:$0xff]  ;;  %v131_v22 = vld [vmem:[#allocation10 + $0x30] sm:$0xff] }
  0x16   :  { %219 = vmatpush.msra.mxu3 %v138_v8  ;;  %143 = vmatpush.msra.mxu1 %v138_v8  ;;  %v80_v23 = vld [vmem:[#allocation8 + $0x10] sm:$0xff]  ;;  %v130_v24 = vld [vmem:[#allocation10 + $0x28] sm:$0xff]  ;;  %v129_v26 = vld [vmem:[#allocation10 + $0x20] sm:$0xff] }
  0x17   :  { %205 = vmatpush.msra.mxu2 %v89_v4  ;;  %102 = vmatpush.msra.mxu0 %v89_v4  ;;  %v79_v25 = vld [vmem:[#allocation8 + $0x8] sm:$0xff]  ;;  %v78_v27 = vld [vmem:[#allocation8] sm:$0xff]  ;;  %v77_v28 = vld [vmem:[#allocation5 + $0x8] sm:$0xff] }
  0x18   :  { %220 = vmatpush.msra.mxu3 %v137_v10  ;;  %144 = vmatpush.msra.mxu1 %v137_v10  ;;  %v76_v29 = vld [vmem:[#allocation5] sm:$0xff]  ;;  %v128_v30 = vld [vmem:[#allocation10 + $0x18] sm:$0xff]  ;;  %v126_v32 = vld [vmem:[#allocation10 + $0x8] sm:$0xff] }
  0x19   :  { %206 = vmatpush.msra.mxu2 %v88_v7  ;;  %103 = vmatpush.msra.mxu0 %v88_v7  ;;  %v127_v31 = vld [vmem:[#allocation10 + $0x10] sm:$0xff]  ;;  %v125_v33 = vld [vmem:[#allocation10] sm:$0xff] }
  0x1a   :  { %221 = vmatpush.msra.mxu3 %v136_v12  ;;  %145 = vmatpush.msra.mxu1 %v136_v12  ;;  %v239_v34 = vld [vmem:[%s417_s3] ss:$0 sm:$0xff]  ;;  %s187_s3 = sshll.u32 %s420_s6, 4  ;;  %s188_s3 = int_to_ptr.hbm [resolvable:$true] %s187_s3 }
  0x1b   :  { %207 = vmatpush.msra.mxu2 %v87_v9  ;;  %104 = vmatpush.msra.mxu0 %v87_v9  ;;  %v240_v41 = vld [vmem:[%s419_s5] ss:$0 sm:$0xff] }
  0x1c   :  { %222 = vmatpush.msra.mxu3 %v135_v14  ;;  %146 = vmatpush.msra.mxu1 %v135_v14 }
  0x1d   :  { %208 = vmatpush.msra.mxu2 %v86_v11  ;;  %105 = vmatpush.msra.mxu0 %v86_v11 }
  0x1e   :  { %223 = vmatpush.msra.mxu3 %v134_v16  ;;  %147 = vmatpush.msra.mxu1 %v134_v16 }
  0x1f   :  { %209 = vmatpush.msra.mxu2 %v85_v13  ;;  %106 = vmatpush.msra.mxu0 %v85_v13 }
  0x20   :  { %224 = vmatpush.msra.mxu3 %v133_v18  ;;  %148 = vmatpush.msra.mxu1 %v133_v18 }
  0x21   :  { %210 = vmatpush.msra.mxu2 %v84_v15  ;;  %107 = vmatpush.msra.mxu0 %v84_v15 }
  0x22   :  { %225 = vmatpush.msra.mxu3 %v132_v20  ;;  %149 = vmatpush.msra.mxu1 %v132_v20 }
  0x23   :  { %211 = vmatpush.msra.mxu2 %v83_v17  ;;  %108 = vmatpush.msra.mxu0 %v83_v17 }
  0x24   :  { %226 = vmatpush.msra.mxu3 %v131_v22  ;;  %150 = vmatpush.msra.mxu1 %v131_v22 }
  0x25   :  { %212 = vmatpush.msra.mxu2 %v82_v19  ;;  %109 = vmatpush.msra.mxu0 %v82_v19 }
  0x26   :  { %227 = vmatpush.msra.mxu3 %v130_v24  ;;  %151 = vmatpush.msra.mxu1 %v130_v24 }
  0x27   :  { %213 = vmatpush.msra.mxu2 %v81_v21  ;;  %110 = vmatpush.msra.mxu0 %v81_v21 }
  0x28   :  { %228 = vmatpush.msra.mxu3 %v129_v26  ;;  %152 = vmatpush.msra.mxu1 %v129_v26 }
  0x29   :  { %214 = vmatpush.msra.mxu2 %v80_v23  ;;  %111 = vmatpush.msra.mxu0 %v80_v23 }
  0x2a   :  { %229 = vmatpush.msra.mxu3 %v128_v30  ;;  %153 = vmatpush.msra.mxu1 %v128_v30 }
  0x2b   :  { %215 = vmatpush.msra.mxu2 %v79_v25  ;;  %112 = vmatpush.msra.mxu0 %v79_v25 }
  0x2c   :  { %230 = vmatpush.msra.mxu3 %v127_v31  ;;  %154 = vmatpush.msra.mxu1 %v127_v31 }
  0x2d   :  { %216 = vmatpush.msra.mxu2 %v78_v27  ;;  %113 = vmatpush.msra.mxu0 %v78_v27 }
  0x2e   :  { %117 = vmatmul.f32.vlgmr.msra.gmra.mxu2 %v77_v28  ;;  %114 = vmatmul.f32.vlgmr.msra.gmra.mxu0 %v76_v29 }
  0x2f   :  { %231 = vmatpush.msra.mxu3 %v126_v32  ;;  %155 = vmatpush.msra.mxu1 %v126_v32 }
  0x31   :  { %232 = vmatpush.msra.mxu3 %v125_v33  ;;  %156 = vmatpush.msra.mxu1 %v125_v33 }
  0xab   :  { %v115_v35 = vpop.f32.mrf.mxu0 }
  0xac   :  { %v116_v36 = vadd.f32 %v239_v34, %v115_v35 }
  0xae   :  { %v121_v37 = vmax.f32 %v116_v36, 0.0 }
  0xb0   :  { %157 = vmatmul.f32.vlgmr.msra.gmra.mxu1 %v121_v37 }
  0xb1   :  { %v118_v38 = vpop.f32.mrf.mxu2 }
  0xb2   :  { %v119_v39 = vadd.f32 %v239_v34, %v118_v38 }
  0xb4   :  { %v122_v40 = vmax.f32 %v119_v39, 0.0 }
  0xb6   :  { %160 = vmatmul.f32.vlgmr.msra.gmra.mxu3 %v122_v40 }
 0x12d   :  { %v158_v42 = vpop.f32.mrf.mxu1 }
 0x12e   :  { %v177_v43 = vadd.f32 %v240_v41, %v158_v42 }
 0x130   :  { %179 = vst [vmem:[#allocation11] sm:$0xff] %v177_v43 }
 0x139   :  { %v161_v44 = vpop.f32.mrf.mxu3 }
 0x13a   :  { %v178_v45 = vadd.f32 %v240_v41, %v161_v44 }
 0x13c   :  { %180 = vst [vmem:[#allocation11 + $0x8] sm:$0xff] %v178_v45 }
 0x13d   :  { %193 = dma.vmem_to_hbm [thread:$0]  %s186_s15, 256, %s188_s3, [#allocation7], %s344_s28, %s344_s28, %s345_s29  }
 0x13e   :  { %341 = dma.done.wait [#allocation7], 256  }
 0x13f   :  { %342 = vsyncadd [#allocation7], 4294967040 }
 0x140   :  { %198 = vsyncpa [#allocation6], 1 }
 0x141   :  { %199 = vsyncpa [#allocation9], 1 }
 0x142   :  { %200 = vsyncpa [#allocation7], 1 }

</bundles_post_ra>
